<compile_context>
chip_gen: v7x
topology: tpu7x:2x2x1
jax: 0.10.0
libtpu: 0.0.40
codegen_flags: <defaults>
</compile_context>

<pallas_src>
import math

import jax
import jax.numpy as jnp
from jax.experimental import pallas as pl
from jax.experimental.pallas import tpu as pltpu


def _make_output_kernel(scope):
    scope = float(scope)

    def kernel(x_ref, w_ref, b_ref, score_ref, geo_ref):
        # x_ref:     (1, 32, T)  input tile (C x spatial), lanes = spatial
        # w_ref:     (6, 32)     fused 1x1-conv weights (Cout x Cin)
        # b_ref:     (6, 1)      fused biases
        # score_ref: (1, 1, T)   sigmoid(conv1)
        # geo_ref:   (1, 5, T)   [sigmoid(conv2)*scope, (sigmoid(conv3)-0.5)*pi]
        x = x_ref[0]                                             # (32, T)
        y = jnp.dot(w_ref[...], x, preferred_element_type=jnp.float32)  # (6, T)
        y = y + b_ref[...]                                       # broadcast (6,1)
        s = jax.nn.sigmoid(y)                                    # (6, T) f32
        score_ref[0] = s[0:1, :].astype(score_ref.dtype)
        geo_ref[0, 0:4, :] = (s[1:5, :] * scope).astype(geo_ref.dtype)
        geo_ref[0, 4:5, :] = ((s[5:6, :] - 0.5) * math.pi).astype(geo_ref.dtype)

    return kernel


def _plan_spatial(hw, n, max_tile=32768, vmem_budget=20 << 20):
    """Choose (padded_hw, tile) for the spatial axis.

    - Prefer the largest multiple-of-128 divisor of hw, capped at max_tile
      (big tiles amortize per-grid-step overhead; kernel is HBM-bound).
    - Keep at least 2 total grid steps when possible so ('parallel','parallel')
      can shard across both TensorCores on v7x.
    - If hw has no multiple-of-128 divisor, a full-dim block is legal but must
      respect VMEM (v7x has the smallest budget); otherwise pad hw to a
      multiple of 128 and tile.
    """
    def best_divisor(v):
        cands = [t for t in range(128, min(v, max_tile) + 1, 128) if v % t == 0]
        if not cands:
            return None
        best = cands[-1]
        if n * (v // best) < 2:          # single grid step: split for megacore
            two = [t for t in cands if v // t >= 2]
            if two:
                best = two[-1]
        return best

    t = best_divisor(hw)
    if t is not None:
        return hw, t
    # No multiple-of-128 divisor: full-dim block if it fits the VMEM budget
    # (double-buffered (32,T) input + (6,T) outputs, f32).
    if 2 * (32 + 6) * hw * 4 <= vmem_budget:
        return hw, hw
    hw_pad = ((hw + 127) // 128) * 128
    return hw_pad, best_divisor(hw_pad)


def output_forward(x_nchw, w_fused, b_fused, scope=512.0, *, max_tile=32768):
    """x_nchw: (N, 32, H, W) float (f32 or bf16). Returns (score, geo) NCHW f32."""
    N, C, H, W = x_nchw.shape
    assert C == 32
    HW = H * W

    x_flat = x_nchw.reshape(N, C, HW)                  # free: no transpose
    HW_pad, T = _plan_spatial(HW, N, max_tile)
    if HW_pad != HW:
        # Rare robustness path (hw with no mult-of-128 divisor and too big for
        # a full-dim block): pad the spatial axis; costs one extra HBM copy.
        x_flat = jnp.pad(x_flat, ((0, 0), (0, 0), (0, HW_pad - HW)))

    # Cast weights to the input dtype (bf16 input path halves DMA read bytes);
    # the dot still accumulates in f32 via preferred_element_type.
    w2d = w_fused.astype(x_flat.dtype)                 # (6, 32)
    b2d = b_fused.reshape(6, 1).astype(jnp.float32)    # (6, 1)

    score_flat, geo_flat = pl.pallas_call(
        _make_output_kernel(scope),
        out_shape=(
            jax.ShapeDtypeStruct((N, 1, HW_pad), jnp.float32),
            jax.ShapeDtypeStruct((N, 5, HW_pad), jnp.float32),
        ),
        grid_spec=pltpu.PrefetchScalarGridSpec(
            num_scalar_prefetch=0,
            grid=(N, HW_pad // T),
            in_specs=[
                pl.BlockSpec((1, 32, T), lambda n, t: (n, 0, t)),
                pl.BlockSpec((6, 32), lambda n, t: (0, 0)),
                pl.BlockSpec((6, 1), lambda n, t: (0, 0)),
            ],
            out_specs=[
                pl.BlockSpec((1, 1, T), lambda n, t: (n, 0, t)),
                pl.BlockSpec((1, 5, T), lambda n, t: (n, 0, t)),
            ],
        ),
        compiler_params=pltpu.CompilerParams(
            dimension_semantics=("parallel", "parallel"),
            vmem_limit_bytes=32 * 1024 * 1024,
        ),
    )(x_flat, w2d, b2d)

    if HW_pad != HW:
        score_flat = score_flat[:, :, :HW]
        geo_flat = geo_flat[:, :, :HW]
    score = score_flat.reshape(N, 1, H, W)             # free: no transpose
    geo = geo_flat.reshape(N, 5, H, W)
    return score, geo


def init_params(key):
    """Deterministic kaiming_normal(fan_out) init for the three 1x1 convs."""
    k1, k2, k3 = jax.random.split(key, 3)
    # fan_out = out_channels * kh * kw = out_channels for a 1x1 conv.
    w1 = jax.random.normal(k1, (1, 32), jnp.float32) * math.sqrt(2.0 / 1.0)
    w2 = jax.random.normal(k2, (4, 32), jnp.float32) * math.sqrt(2.0 / 4.0)
    w3 = jax.random.normal(k3, (1, 32), jnp.float32) * math.sqrt(2.0 / 1.0)
    # Fused weight (Cout_total, Cin) = (6, 32), channel order [score, loc(4), angle].
    w_fused = jnp.concatenate([w1, w2, w3], axis=0)    # (6, 32)
    b_fused = jnp.zeros((6,), jnp.float32)             # biases init to 0
    return w_fused, b_fused


def reference_forward(x_nchw, w_fused, b_fused, scope=512.0):
    """Pure-JAX reference of the PyTorch forward for sanity checking."""
    N, C, H, W = x_nchw.shape
    x = x_nchw.astype(jnp.float32).reshape(N, C, H * W)
    y = jax.nn.sigmoid(
        jnp.einsum("oc,nct->not", w_fused.astype(jnp.float32), x)
        + b_fused[None, :, None]
    )
    score = y[:, 0:1]
    loc = y[:, 1:5] * scope
    angle = (y[:, 5:6] - 0.5) * math.pi
    geo = jnp.concatenate([loc, angle], axis=1)
    return score.reshape(N, 1, H, W), geo.reshape(N, 5, H, W)


if __name__ == "__main__":
    key = jax.random.PRNGKey(0)
    kx, kp = jax.random.split(key)

    # Small shapes consistent with the module: in_channels must be 32.
    N, C, H, W = 2, 32, 16, 16
    x = jax.random.normal(kx, (N, C, H, W), jnp.float32)

    w_fused, b_fused = init_params(kp)

    score, geo = output_forward(x, w_fused, b_fused)
    jax.block_until_ready((score, geo))

    score_ref, geo_ref = reference_forward(x, w_fused, b_fused)
    assert score.shape == (N, 1, H, W)
    assert geo.shape == (N, 5, H, W)
    assert jnp.allclose(score, score_ref, atol=1e-5, rtol=1e-5)
    assert jnp.allclose(geo, geo_ref, atol=1e-3, rtol=1e-5)

    print("KERNEL_OK")
</pallas_src>

<mosaic_0001>
module attributes {stable_mosaic.version = 11 : i64} {
  func.func @kernel(%arg0: i32, %arg1: i32, %arg2: memref<1x32x256xf32, #tpu.memory_space<vmem>>, %arg3: memref<6x32xf32, #tpu.memory_space<vmem>>, %arg4: memref<6x1xf32, #tpu.memory_space<vmem>>, %arg5: memref<1x1x256xf32, #tpu.memory_space<vmem>>, %arg6: memref<1x5x256xf32, #tpu.memory_space<vmem>>) attributes {dimension_semantics = [#tpu.dimension_semantics<parallel>, #tpu.dimension_semantics<parallel>], iteration_bounds = array<i64: 2, 1>, scalar_prefetch = 0 : i64, scratch_operands = 0 : i64, tpu.core_type = #tpu.core_type<tc>, window_params = [{transform_indices = @transform_0, window_bounds = array<i64: 1, 32, 256>}, {pipeline_mode = #tpu.pipeline_mode<synchronous>, transform_indices = @transform_1, window_bounds = array<i64: 6, 32>}, {pipeline_mode = #tpu.pipeline_mode<synchronous>, transform_indices = @transform_2, window_bounds = array<i64: 6, 1>}, {transform_indices = @transform_3, window_bounds = array<i64: 1, 1, 256>}, {transform_indices = @transform_4, window_bounds = array<i64: 1, 5, 256>}]} {
    %c0 = arith.constant 0 : index
    %c0_0 = arith.constant 0 : index
    %c0_1 = arith.constant 0 : index
    %0 = vector.load %arg2[%c0, %c0_0, %c0_1] : memref<1x32x256xf32, #tpu.memory_space<vmem>>, vector<1x32x256xf32>
    %1 = vector.shape_cast %0 : vector<1x32x256xf32> to vector<32x256xf32>
    %c0_2 = arith.constant 0 : index
    %c0_3 = arith.constant 0 : index
    %2 = vector.load %arg3[%c0_2, %c0_3] : memref<6x32xf32, #tpu.memory_space<vmem>>, vector<6x32xf32>
    %cst = arith.constant dense<0.000000e+00> : vector<6x256xf32>
    %3 = tpu.matmul %2, %1, %cst {dimension_numbers = #tpu.dot_dimension_numbers<[1], [0], [0], [1], [0, 0, 1, 1], [], []>} : vector<6x32xf32>, vector<32x256xf32>, vector<6x256xf32> -> vector<6x256xf32>
    %c0_4 = arith.constant 0 : index
    %c0_5 = arith.constant 0 : index
    %4 = vector.load %arg4[%c0_4, %c0_5] : memref<6x1xf32, #tpu.memory_space<vmem>>, vector<6x1xf32>
    %5 = vector.broadcast %4 : vector<6x1xf32> to vector<6x256xf32>
    %6 = arith.addf %3, %5 : vector<6x256xf32>
    %7 = arith.negf %6 : vector<6x256xf32>
    %8 = math.exp %7 : vector<6x256xf32>
    %cst_6 = arith.constant 1.000000e+00 : f32
    %9 = vector.broadcast %cst_6 : f32 to vector<6x256xf32>
    %10 = arith.addf %9, %8 : vector<6x256xf32>
    %11 = arith.divf %9, %10 : vector<6x256xf32>
    %12 = vector.extract_strided_slice %11 {offsets = [0, 0], sizes = [1, 256], strides = [1, 1]} : vector<6x256xf32> to vector<1x256xf32>
    %c0_7 = arith.constant 0 : index
    %c0_8 = arith.constant 0 : index
    %c0_9 = arith.constant 0 : index
    %13 = vector.load %arg5[%c0_7, %c0_8, %c0_9] : memref<1x1x256xf32, #tpu.memory_space<vmem>>, vector<1x1x256xf32>
    %14 = vector.shape_cast %13 : vector<1x1x256xf32> to vector<1x256xf32>
    %15 = vector.shape_cast %12 : vector<1x256xf32> to vector<1x1x256xf32>
    tpu.vector_store %arg5[%c0_7, %c0_8, %c0_9], %15 {strides = array<i32>} : memref<1x1x256xf32, #tpu.memory_space<vmem>>, vector<1x1x256xf32>,
    %16 = vector.extract_strided_slice %11 {offsets = [1, 0], sizes = [4, 256], strides = [1, 1]} : vector<6x256xf32> to vector<4x256xf32>
    %cst_10 = arith.constant 5.120000e+02 : f32
    %17 = vector.broadcast %cst_10 : f32 to vector<4x256xf32>
    %18 = arith.mulf %16, %17 : vector<4x256xf32>
    %c0_11 = arith.constant 0 : index
    %c0_12 = arith.constant 0 : index
    %c0_13 = arith.constant 0 : index
    %19 = vector.load %arg6[%c0_11, %c0_12, %c0_13] : memref<1x5x256xf32, #tpu.memory_space<vmem>>, vector<1x4x256xf32>
    %20 = vector.shape_cast %19 : vector<1x4x256xf32> to vector<4x256xf32>
    %21 = vector.shape_cast %18 : vector<4x256xf32> to vector<1x4x256xf32>
    tpu.vector_store %arg6[%c0_11, %c0_12, %c0_13], %21 {strides = array<i32>} : memref<1x5x256xf32, #tpu.memory_space<vmem>>, vector<1x4x256xf32>,
    %22 = vector.extract_strided_slice %11 {offsets = [5, 0], sizes = [1, 256], strides = [1, 1]} : vector<6x256xf32> to vector<1x256xf32>
    %cst_14 = arith.constant 5.000000e-01 : f32
    %23 = vector.broadcast %cst_14 : f32 to vector<1x256xf32>
    %24 = arith.subf %22, %23 : vector<1x256xf32>
    %cst_15 = arith.constant 3.14159274 : f32
    %25 = vector.broadcast %cst_15 : f32 to vector<1x256xf32>
    %26 = arith.mulf %24, %25 : vector<1x256xf32>
    %c0_16 = arith.constant 0 : index
    %c4 = arith.constant 4 : index
    %c0_17 = arith.constant 0 : index
    %27 = vector.load %arg6[%c0_16, %c4, %c0_17] : memref<1x5x256xf32, #tpu.memory_space<vmem>>, vector<1x1x256xf32>
    %28 = vector.shape_cast %27 : vector<1x1x256xf32> to vector<1x256xf32>
    %29 = vector.shape_cast %26 : vector<1x256xf32> to vector<1x1x256xf32>
    tpu.vector_store %arg6[%c0_16, %c4, %c0_17], %29 {strides = array<i32>} : memref<1x5x256xf32, #tpu.memory_space<vmem>>, vector<1x1x256xf32>,
    return
  }
  func.func @transform_0(%arg0: i32, %arg1: i32) -> (i32, i32, i32) {
    %c0_i32 = arith.constant 0 : i32
    %c0_i32_0 = arith.constant 0 : i32
    return %arg0, %c0_i32, %arg1 : i32, i32, i32
  }
  func.func @transform_1(%arg0: i32, %arg1: i32) -> (i32, i32) {
    %c0_i32 = arith.constant 0 : i32
    %c0_i32_0 = arith.constant 0 : i32
    %c0_i32_1 = arith.constant 0 : i32
    return %c0_i32, %c0_i32_0 : i32, i32
  }
  func.func @transform_2(%arg0: i32, %arg1: i32) -> (i32, i32) {
    %c0_i32 = arith.constant 0 : i32
    %c0_i32_0 = arith.constant 0 : i32
    %c0_i32_1 = arith.constant 0 : i32
    return %c0_i32, %c0_i32_0 : i32, i32
  }
  func.func @transform_3(%arg0: i32, %arg1: i32) -> (i32, i32, i32) {
    %c0_i32 = arith.constant 0 : i32
    %c0_i32_0 = arith.constant 0 : i32
    return %arg0, %c0_i32, %arg1 : i32, i32, i32
  }
  func.func @transform_4(%arg0: i32, %arg1: i32) -> (i32, i32, i32) {
    %c0_i32 = arith.constant 0 : i32
    %c0_i32_0 = arith.constant 0 : i32
    return %arg0, %c0_i32, %arg1 : i32, i32, i32
  }
}

</mosaic_0001>

<bundles_post_ra>
// kernel: tpu_custom_call.1
= control target key start
LH: loop header
LB: loop body
LE: loop exit
PB: predicated region body
PF: predicated region fallthrough
CT: control target
= control target key end

     0   :  { %10 = vsyncpa [#allocation3], 0  ;;  %s1026_s0 = inlined_call_operand.hbm [shape: f32[2,32,256], index: 0, kind: input, shape index: {}]   ;;  %s1027_s1 = inlined_call_operand.vmem [shape: f32[6,32], index: 1, kind: input, shape index: {}]   ;;  %s1028_s2 = inlined_call_operand.vmem [shape: f32[6,1], index: 2, kind: input, shape index: {}]   ;;  %s1029_s3 = inlined_call_operand.hbm [shape: f32[2,1,256], index: 3, kind: output, shape index: {0}]   ;;  %s1030_s4 = inlined_call_operand.vmem [shape: f32[2,5,256], index: 4, kind: output, shape index: {1}]  }
   0x1   :  { %12 = vsyncpa [#allocation3 + $0x1], 0 }
   0x2   :  { %13 = vsyncpa [#allocation4], 0 }
   0x3   :  { %15 = vsyncpa [#allocation4 + $0x1], 0  ;;  %s828_s15 = smov 0   ;;  %s830_s16 = smov 0  }
   0x4   :  { %s832_s17 = smov 0   ;;  %s834_s18 = smov 0  }
   0x5   :  { %s836_s19 = smov 0   ;;  %s838_s20 = smov 0  }
   0x6 LB: > { %s572_s21 = sadd.s32 4294967295, %s794_s20   ;;  %s573_s22 = sadd.s32 4294967294, %s794_s20   ;;  %s794_s20 = sphi %s838_s20, %s21_s20   ;;  %s790_s19 = sphi %s836_s19, %s1047_s19   ;;  %s786_s18 = sphi %s834_s18, %s1046_s18   ;;  %s782_s17 = sphi %s832_s17, %s1045_s17   ;;  %s778_s16 = sphi %s830_s16, %s1044_s16   ;;  %s774_s15 = sphi %s828_s15, %s1043_s15  }
   0x7   : > { %s33_s23 = sadd.s32 1, %s790_s19  ;;  %s42_s24 = sadd.s32 1, %s782_s17 }
   0x8   : > { %p35_p0 = scmp.ge.s32.totalorder %s33_s23, 2  ;;  %p49_p1 = scmp.ne.s32.totalorder %s782_s17, %s778_s16 }
   0x9   : > { %p50_p2 = scmp.eq.s32.totalorder %s794_s20, 0  ;;  %p55_p3 = scmp.ne.s32.totalorder %s778_s16, %s774_s15 }
   0xa   : > { %s1049_s23 = smov (%p35_p0, %s33_s23), 0  ;;  %p56_p5 = scmp.eq.s32.totalorder %s572_s21, 0 }
   0xb   : > { %p869_p4 = por %p50_p2, %p49_p1  ;;  %s37_s26 = ssub.s32 %s790_s19, %s1049_s23 }
   0xc   : > { %p123_p6 = scmp.eq.s32.totalorder %s572_s21, 1  ;;  %p40_p7 = scmp.eq.s32.totalorder %s37_s26, 0 }
   0xd   : > { %p875_p8 = por %p56_p5, %p55_p3  ;;  %p129_p10 = scmp.eq.s32.totalorder %s573_s22, 1 }
   0xe   : > { %p879_p9 = por %p123_p6, %p49_p1  ;;  %p618_p13 = scmp.lt.s32.totalorder %s794_s20, 2 }
   0xf   : > { %s884_s29 = scalar_select %p40_p7, %s782_s17, %s42_s24  }
  0x10   : > { %s1034_s28 = scalar_select %p879_p9, 1, 0 }
  0x11   : > { %p886_p11 = por %p129_p10, %p55_p3  ;;  %s183_s5 = sand.u32 1, %s782_s17  }
  0x12   : > { %s576_s6 = sshll.u32 %s183_s5, 6  ;;  %s595_s7 = sshll.u32 %s790_s19, 10 }
  0x13   : > { %s1035_s30 = scalar_select %p886_p11, 1, 0 }
  0x14   : > { %s897_s10 = scalar_lea.hbm %s1026_s0, %s595_s7  ;;  %s187_s11 = scalar_lea.vmem [#allocation2], %s576_s6 }
  0x15   : > { %s196_s12 = sshll.u32 %s187_s11, 4  ;;  %p903_p0 = pnand %p618_p13, %p869_p4  ;;  %s899_s12 = int_to_ptr.vmem [resolvable:$true] %s196_s12 }
  0x16   : > { %s908_s14 = scalar_lea.sflag [#allocation3], %s183_s5  ;;  %s682_s21 = scalar_lea.hbm %s897_s10, 1024 }
  0x17   : > { %p683_p2 = scmp.ne.s32.totalorder %s897_s10, %s682_s21  ;;  %p684_p3 = pneg %p903_p0 }
  0x18   : > { %s687_s25 = scalar_lea.hbm %s1026_s0, 2048  ;;  %p688_p4 = scmp.lt.u32.totalorder %s897_s10, %s1026_s0 }
  0x19   : > { %p685_p5 = pnand %p684_p3, %p683_p2  ;;  %p689_p7 = scmp.lt.u32.totalorder %s687_s25, %s682_s21 }
  0x1a   : > { %p691_p13 = scmp.lt.u32.totalorder %s682_s21, %s897_s10 }
  0x1b   : > { %p686_p6 = pneg %p685_p5  ;;  %p690_p10 = por %p689_p7, %p688_p4 }
  0x1d   : > { %p692_p12 = por %p691_p13, %p690_p10 }
  0x1f   : > { %p693_p1 = pnand %p692_p12, %p686_p6 }
  0x21   : > { %696 = shalt.err (!%p693_p1)
}
  0x22   : > { %s697_s5 = scalar_lea.vmem %s899_s12, 1024  ;;  %s796_s7 = smov [#allocation2]  }
  0x23   : > { %p698_p2 = scmp.ne.s32.totalorder %s899_s12, %s697_s5  ;;  %s702_s8 = sshll.u32 %s796_s7, 4  ;;  %s703_s8 = int_to_ptr.vmem [resolvable:$false] %s702_s8 }
  0x24   : > { %s704_s9 = scalar_lea.vmem %s703_s8, 2048  ;;  %p705_p9 = scmp.lt.s32.totalorder %s899_s12, %s703_s8 }
  0x25   : > { %p700_p5 = pnand %p698_p2, %p684_p3  ;;  %p706_p4 = scmp.lt.s32.totalorder %s704_s9, %s697_s5 }
  0x27   : > { %p701_p11 = pneg %p700_p5  ;;  %p707_p7 = por %p706_p4, %p705_p9 }
  0x29   : > { %p708_p10 = pnand %p707_p7, %p701_p11 }
  0x2b   : > { %711 = shalt.err (!%p708_p10)
}
  0x2c   : > { %s797_s11 = smov 256   ;;  %s798_s21 = smov 16  }
  0x2d   : > { %613 = dma.hbm_to_vmem [thread:$0]  (!%p903_p0), %s897_s10, 1024, %s899_s12, %s908_s14, %s797_s11, %s797_s11, %s798_s21  }
  0x2e   : > { %p204_p12 = scmp.lt.s32.totalorder %s794_s20, 3  ;;  %p1037_p1 = scmp.ge.s32.totalorder %s794_s20, 1 }
  0x30   : > { %p205_p3 = pnand %p1037_p1, %p204_p12 }
  0x31   : > { %s940_s22 = sand.u32 (!%p205_p3), 1, %s778_s16  }
  0x32   : > { %208 = sbr.rel (%p205_p3) target bundleno = 334 (0x14e), region = 32  ;;  %s580_s24 = sshll.u32 (!%p205_p3), %s940_s22, 6 }
  0x33   : > { %s211_s25 = scalar_lea.sflag (!%p205_p3), [#allocation3], %s940_s22  ;;  %s214_s26 = scalar_lea.vmem (!%p205_p3), [#allocation2], %s580_s24 }
  0x39   : > { %765 = dma.done.wait (%p875_p8), %s211_s25, 1024  }
  0x3a   : > { %767 = vsyncadd (%p875_p8), %s211_s25, 4294966272  ;;  %v799_v0 = vmov 0.0   ;;  %v800_v1 = vmov 0   ;;  %v261_v2 = vld [vmem:[%s214_s26 + $0x8] sm:$0xff]  ;;  %v263_v3 = vld [vmem:[%s214_s26 + $0x18] sm:$0xff]  ;;  %vm275_vm0 = vcmask 261120   ;;  %v368_v29 = vlaneseq }
  0x3b   : > { %343 = vmatprep.mubr.f32.mxu0 %v799_v0  ;;  %673 = vset.pattern.permute.xlu0 %v800_v1  ;;  %v260_v4 = vld [vmem:[%s214_s26] sm:$0xff]  ;;  %v598_v5 = vpack.c.bf16 %v263_v3, %v261_v2  ;;  %v262_v6 = vld [vmem:[%s214_s26 + $0x10] sm:$0xff]  ;;  %v265_v7 = vld [vmem:[%s214_s26 + $0x28] sm:$0xff]  ;;  %p251_p8 = scmp.lt.s32.totalorder %s786_s18, 1  ;;  %v801_v27 = vmov 1966171168  }
  0x3c   : > { %v267_v8 = vld [vmem:[%s214_s26 + $0x38] sm:$0xff]  ;;  %v600_v9 = vpack.c.bf16 %v262_v6, %v260_v4  ;;  %v264_v11 = vld [vmem:[%s214_s26 + $0x20] sm:$0xff]  ;;  %v266_v12 = vld [vmem:[%s214_s26 + $0x30] sm:$0xff]  ;;  %v366_v28 = vunpack.c.l.s4 %v801_v27  ;;  %v369_v31 = vshrl.u32 %v368_v29, 7  ;;  %s581_s6 = sshll.u32 %s940_s22, 1  ;;  %s597_s11 = sshll.u32 %s786_s18, 5 }
  0x3d   : > { %v602_v10 = vpack.c.bf16 %v267_v8, %v265_v7  ;;  %599 = vmatprep.subr.bf16.mxu0 %v598_v5  ;;  %v269_v13 = vld [vmem:[%s1028_s2] sm:$0x3f]  ;;  %v604_v14 = vpack.c.bf16 %v266_v12, %v264_v11  ;;  %s252_s14 = scalar_select %p251_p8, %s786_s18, 1  ;;  %vm963_vm1 = vcmp.lt.s32.totalorder %v368_v29, 256 }
  0x3e   : > { %601 = vmatpush1.bf16.msra.mxu0 %v600_v9  ;;  %272 = vperm.xlu0 %673, %v269_v13   ;;  %v268_v15 = vld [vmem:[%s1027_s1] sm:$0x3f]  ;;  %v367_v30 = vunpack.c.0.s8 %v366_v28  ;;  %s236_s21 = scalar_lea.vmem [#allocation5], %s581_s6  ;;  %s972_s10 = scalar_lea.hbm %s1029_s3, %s597_s11 }
  0x3f   : > { %603 = vmatprep.subr.bf16.mxu0 %v602_v10  ;;  %s596_s5 = sshll.u32 %s252_s14, 4  ;;  %s447_s24 = sshll.u32 %s236_s21, 4  ;;  %s974_s24 = int_to_ptr.vmem [resolvable:$true] %s447_s24 }
  0x40   : > { %v370_v33 = vsub.s32 %v367_v30, %v369_v31  ;;  %s960_s9 = scalar_lea.vmem %s1030_s4, %s596_s5  ;;  %s422_s18 = scalar_lea.sflag [#allocation4], %s940_s22 }
  0x41   : > { %s712_s12 = scalar_lea.vmem %s974_s24, 32  ;;  %p1040_p11 = scmp.ne.s32.totalorder %s1034_s28, 0 }
  0x42   : > { %605 = vmatpush1.bf16.msra.mxu0 %v604_v14  ;;  %p713_p9 = scmp.ne.s32.totalorder %s974_s24, %s712_s12  ;;  %s802_s27 = smov [#allocation5]  }
  0x43   : > { %s716_s13 = sshll.u32 %s802_s27, 4  ;;  %s717_s13 = int_to_ptr.vmem [resolvable:$false] %s716_s13 }
  0x44   : > { %p714_p0 = pnand %p713_p9, %p1040_p11  ;;  %s718_s14 = scalar_lea.vmem %s717_s13, 64 }
  0x45   : > { %584 = vmatmul.mubr.msk.f32.vlgmr.msra.gmra.mrb[0].mxu0 %vm275_vm0, %v268_v15  ;;  %p719_p13 = scmp.lt.s32.totalorder %s974_s24, %s717_s13  ;;  %p720_p2 = scmp.lt.s32.totalorder %s718_s14, %s712_s12 }
  0x46   : > { %p715_p6 = pneg %p714_p0 }
  0x47   : > { %p721_p5 = por %p720_p2, %p719_p13 }
  0x49   : > { %p722_p4 = pnand %p721_p5, %p715_p6 }
  0xbd   : > { %v273_v16 = vpop.permute.xlu0 %272 }
 0x118   : > { %v345_v17 = vpop.f32.mrb[0].mxu0 }
 0x119   : > { %v346_v18 = vadd.f32 %v345_v17, %v273_v16  ;;  %v347_v19 = vpop.f32.mrb[1].mxu0 }
 0x11a   : > { %v348_v20 = vadd.f32 %v347_v19, %v273_v16 }
 0x11b   : > { %v585_v21 = vmul.f32 -1.442695, %v346_v18 }
 0x11c   : > { %v586_v22 = vmul.f32 -1.442695, %v348_v20 }
 0x11d   : > { %674 = vpow2.f32 %v585_v21 }
 0x11e   : > { %676 = vpow2.f32 %v586_v22 }
 0x127   : > { %v675_v23 = vpop.eup %674 }
 0x128   : > { %v677_v24 = vpop.eup %676  ;;  %v356_v25 = vadd.f32 1.0, %v675_v23 }
 0x129   : > { %v357_v26 = vadd.f32 1.0, %v677_v24 }
 0x12a   : > { %678 = vrcp.f32 %v356_v25 }
 0x12b   : > { %680 = vrcp.f32 %v357_v26 }
 0x134   : > { %v679_v32 = vpop.eup %678 }
 0x135   : > { %v681_v34 = vpop.eup %680  ;;  %v385_v35 = vmul.f32 512.0, %v679_v32  ;;  %v587_v36 = vadd.f32 -0.5, %v679_v32 }
 0x136   : > { %v364_v37 = vcombine.low %v679_v32, %v681_v34  ;;  %v386_v38 = vmul.f32 512.0, %v681_v34  ;;  %v588_v39 = vadd.f32 -0.5, %v681_v34 }
 0x137   : > { %v389_v40 = vrot.slane %v385_v35, 1  ;;  %v397_v41 = vmul.f32 3.1415927, %v587_v36 }
 0x138   : > { %v371_v42 = vrot.slane %v364_v37, %v370_v33  ;;  %v390_v43 = vrot.slane %v386_v38, 1  ;;  %v398_v44 = vmul.f32 3.1415927, %v588_v39 }
 0x139   : > { %393 = vst [vmem:[%s960_s9] sm:$0xf] %v389_v40 }
 0x13a   : > { %v378_v46 = vrot.slane %v371_v42, %v370_v33  ;;  %394 = vst [vmem:[%s960_s9 + $0x8] sm:$0xf] %v390_v43  ;;  %v401_v47 = vcombine.high %v397_v41, %v398_v44 }
 0x13c   : > { %384 = vst.msk [vmem:[%s236_s21] sm:$0x3] %vm963_vm1, %v378_v46  ;;  %v408_v48 = vrot.slane %v401_v47, %v370_v33 }
 0x13d   : > { %725 = shalt.err (!%p722_p4)
}
 0x13e   : > { %s726_s22 = scalar_lea.hbm %s972_s10, 32  ;;  %s730_s7 = scalar_lea.hbm %s1029_s3, 64 }
 0x13f   : > { %p727_p7 = scmp.ne.s32.totalorder %s972_s10, %s726_s22  ;;  %p731_p1 = scmp.lt.u32.totalorder %s972_s10, %s1029_s3 }
 0x140   : > { %p732_p3 = scmp.lt.u32.totalorder %s730_s7, %s726_s22  ;;  %p734_p9 = scmp.lt.u32.totalorder %s726_s22, %s972_s10 }
 0x141   : > { %p728_p10 = pnand %p727_p7, %p1040_p11 }
 0x142   : > { %p733_p8 = por %p732_p3, %p731_p1 }
 0x143   : > { %p729_p12 = pneg %p728_p10 }
 0x144   : > { %p735_p0 = por %p734_p9, %p733_p8 }
 0x146   : > { %p736_p6 = pnand %p735_p0, %p729_p12 }
 0x148   : > { %739 = shalt.err (!%p736_p6)
}
 0x149   : > { %608 = dma.vmem_to_hbm [thread:$0]  (%p1040_p11), %s974_s24, 32, %s972_s10, %s422_s18   ;;  %v409_v49 = vcombine.high %v408_v48, %v408_v48 }
 0x14b   : > { %v416_v50 = vrot.slane %v409_v49, %v370_v33 }
 0x14d   : > { %589 = vst.msk [vmem:[%s960_s9 + $0x4] ss:$8 sm:$0x3] %vm963_vm1, %v416_v50 }
 0x14e PF: > { %s463_s21 = sand.u32 1, %s774_s15   ;;  %p1041_p13 = scmp.ne.s32.totalorder %s1035_s30, 0 }
 0x14f   : > { %p1042_p2 = scmp.ge.s32.totalorder %s794_s20, 2  ;;  %s464_s25 = scalar_lea.sflag [#allocation4], %s463_s21 }
 0x151   : > { %p615_p5 = pnand %p1042_p2, %p1041_p13 }
 0x153   : > { %769 = dma.done.wait (!%p615_p5), %s464_s25, 32  }
 0x154   : > { %771 = vsyncadd (!%p615_p5), %s464_s25, 4294967264  ;;  %s21_s20 = sadd.s32 1, %s794_s20   ;;  %s1043_s15 = smov %s778_s16 }
 0x155   : > { %p18_p4 = scmp.ge.s32.totalorder %s21_s20, 4   ;;  %s1044_s16 = smov %s782_s17 }
 0x156   : > { %s1045_s17 = smov %s884_s29  ;;  %s1046_s18 = smov %s790_s19 }
 0x157   : > { %s1047_s19 = smov %s1049_s23  ;;  %20 = sbr.rel (!%p18_p4) target bundleno = 6 (0x6), region = 90 }
 0x15e   :  { %481 = vsyncpa [#allocation3], 1 }
 0x15f   :  { %483 = vsyncpa [#allocation3 + $0x1], 1 }
 0x160   :  { %484 = vsyncpa [#allocation4], 1 }
 0x161   :  { %486 = vsyncpa [#allocation4 + $0x1], 1 }

</bundles_post_ra>
